<compile_context>
chip_gen: v7x
topology: tpu7x:2x2x1
jax: 0.10.0
libtpu: 0.0.40
codegen_flags: <defaults>
</compile_context>

<pallas_src>
import functools

import numpy as np
import jax
import jax.numpy as jnp
from jax.experimental import pallas as pl
from jax.experimental.pallas import tpu as pltpu


def _round_up(x, m):
    return (x + m - 1) // m * m


def _vmem_cap_bytes():
    try:
        return int(pltpu.get_tpu_info().vmem_capacity_bytes)
    except Exception:
        return 64 << 20                      # conservative (v7x-sized) fallback


def _pick_tile_rows(NH, W, Cin, Cqp, vmem_cap):
    """Image rows per grid step: largest tile whose double-buffered in/out windows plus
    the resident weight fit a generation-aware per-pass VMEM budget."""
    budget = int(min(32 << 20, vmem_cap // 4))            # ~16 MiB on v7x, 32 MiB on v5e/v6e
    w_res = 4 * Cin * Cqp * 2                             # resident bf16 weight
    per_q = 2 * (W + 1) * 2 * Cin * 2 + 2 * W * Cqp * 4   # dbl-buffered bf16 in + f32 out
    tq = (budget - w_res) // max(per_q, 1)
    return int(max(1, min(tq, NH, max(1, 4096 // max(W, 1)))))


def _resident_spec(shape, nbytes):
    """Grid-invariant operand; single-buffered when it is big enough to matter."""
    imap = lambda *_: (0,) * len(shape)
    if nbytes > (1 << 20):
        try:
            return pl.BlockSpec(shape, imap, pipeline_mode=pl.Buffered(1))
        except Exception:                    # older jax without pipeline_mode support
            pass
    return pl.BlockSpec(shape, imap)


def _build_w_big(w_t, Cin, Cout, Cqp):
    """Block-sparse equivalent weight of the phase-decomposed ConvTranspose2d.

    Output row oh = 2*i + dy is fed by input row i+di through kernel tap kh:
        dy=0: (di=0, kh=1)          dy=1: (di=1, kh=0), (di=0, kh=2)
    (identically for columns).  Patch channel order is (dj major, di minor) x Cin to
    match the in-kernel concat; output column order is phase p = dy*2+dx, x Cout.
    Built with one two-level concatenate (no per-block dynamic-update-slice).
    """
    # TODO(synk): W_big only depends on the weights; a caller doing many forward
    # passes could hoist/cache its construction outside the per-call path.
    KMAP = {(0, 0): 1, (0, 1): 2, (1, 1): 0}      # (d, output parity) -> kernel index
    zero_blk = jnp.zeros((Cin, Cout), w_t.dtype)
    rows = []
    for dj in (0, 1):
        for di in (0, 1):
            cols = []
            for dy in (0, 1):
                for dx in (0, 1):
                    kh = KMAP.get((di, dy))
                    kw = KMAP.get((dj, dx))
                    cols.append(zero_blk if (kh is None or kw is None)
                                else w_t[:, :, kh, kw])
            rows.append(jnp.concatenate(cols, axis=1))
    w_big = jnp.concatenate(rows, axis=0)          # (4*Cin, 4*Cout)
    return jnp.pad(w_big, ((0, 0), (0, Cqp - 4 * Cout))).astype(jnp.bfloat16)


# ------------------------------ Pallas kernels ---------------------------------
def _stats_kernel(xv_ref, w_ref, sum_ref, ssq_ref, *, tq, width):
    """Pass 1 (is_act=True only): per-column sum / sum-of-squares of
    y = patches @ W_big (no bias -- BatchNorm cancels it).  Stats accumulate across
    the 'arbitrary' grid axis; the 'parallel' axis gives per-core partial sums."""
    r = pl.program_id(1)

    @pl.when(r == 0)
    def _():
        sum_ref[...] = jnp.zeros_like(sum_ref)
        ssq_ref[...] = jnp.zeros_like(ssq_ref)

    cqp = sum_ref.shape[-1]

    def body(q, carry):
        s, ss = carry
        xq = xv_ref[q]                                              # (W+1, 2*Cin) bf16
        patch = jnp.concatenate([xq[0:width, :], xq[1:width + 1, :]], axis=-1)
        y = jnp.dot(patch, w_ref[...], preferred_element_type=jnp.float32)
        s = s + jnp.sum(y, axis=0, keepdims=True)
        ss = ss + jnp.sum(y * y, axis=0, keepdims=True)
        return s, ss

    zero = jnp.zeros((1, cqp), jnp.float32)
    s, ss = jax.lax.fori_loop(0, tq, body, (zero, zero))
    sum_ref[0:1, :] += s
    ssq_ref[0:1, :] += ss


def _apply_kernel(xv_ref, w_ref, scale_ref, shift_ref, o_ref, *, tq, width, relu):
    """Pass 2: out = [relu](patches @ W_big * scale + shift), lane-dense stores.
    For is_act=True scale/shift fold the batch statistics; for is_act=False they are
    (1, bias) and relu=False, i.e. the plain deconv output."""
    scale = scale_ref[...]
    shift = shift_ref[...]

    def body(q, carry):
        xq = xv_ref[q]                                              # (W+1, 2*Cin) bf16
        patch = jnp.concatenate([xq[0:width, :], xq[1:width + 1, :]], axis=-1)
        y = jnp.dot(patch, w_ref[...], preferred_element_type=jnp.float32)
        y = y * scale + shift
        if relu:
            y = jnp.maximum(y, 0.0)
        o_ref[q] = y.astype(o_ref.dtype)
        return carry

    jax.lax.fori_loop(0, tq, body, 0)


# --------------------------------- wrapper --------------------------------------
@functools.partial(jax.jit,
                   static_argnames=("is_act", "eps", "tile_rows", "out_dtype"))
def deconv_block(x, w_t, b, gamma, beta, *, is_act=True, eps=1e-5,
                 tile_rows=None, out_dtype=jnp.float32):
    """x: (N, Cin, H, W) NCHW; w_t: (Cin, Cout, 3, 3) (PyTorch ConvTranspose2d layout).
    Returns (N, Cout, 2H, 2W), matching DeconvBlock.forward(x, is_act).
    BN uses training-mode batch statistics (biased variance), like the PyTorch module
    in train mode; running statistics are not tracked."""
    N, Cin, H, W = x.shape
    _, Cout, K, K2 = w_t.shape
    assert K == 3 and K2 == 3, "kernel specialized to k_size=3"
    Hout, Wout = 2 * H, 2 * W
    NH = N * H
    Cq = 4 * Cout
    Cqp = _round_up(Cq, 128)                 # lane-dense (unmasked vst) output width

    # ---- LHS prep: NHWC bf16, zero-pad bottom/right, stack the two VERTICAL taps.
    # The horizontal (j / j+1) taps are sliced in-kernel from the W+1-wide row, so
    # the input is duplicated only 2x instead of the 4x of a full im2col.
    # TODO(synk): a halo BlockSpec over the single padded image would remove the
    # remaining 2x vertical duplication as well.
    x_nhwc = jnp.transpose(x, (0, 2, 3, 1)).astype(jnp.bfloat16)     # (N,H,W,Cin)
    xpad = jnp.pad(x_nhwc, ((0, 0), (0, 1), (0, 1), (0, 0)))         # (N,H+1,W+1,Cin)
    xv = jnp.concatenate([xpad[:, :H], xpad[:, 1:]], axis=-1)        # (N,H,W+1,2Cin)
    xv = xv.reshape(NH, W + 1, 2 * Cin)

    # ---- tiling (generation-aware VMEM budget) ----
    vmem_cap = _vmem_cap_bytes()
    tq = tile_rows if tile_rows is not None else _pick_tile_rows(NH, W, Cin, Cqp, vmem_cap)
    R = pl.cdiv(NH, tq)                      # row tiles over the flat (n*H + i) axis
    nc = 2 if (is_act and R >= 2) else 1     # v7x: split the stats pass over both cores
    Rp = pl.cdiv(R, nc)
    Rtot = nc * Rp
    Qpad = Rtot * tq
    xv = jnp.pad(xv, ((0, Qpad - NH), (0, 0), (0, 0)))   # zero rows -> 0 stats contribution

    out_isz = np.dtype(out_dtype).itemsize
    in_tile = tq * (W + 1) * 2 * Cin * 2
    out_tile = tq * W * Cqp * out_isz
    w_bytes = 4 * Cin * Cqp * 2
    need = 2 * in_tile + 2 * out_tile + 2 * w_bytes + 16 * Cqp * 4 + (4 << 20)
    vmem_limit = int(min(max(vmem_cap - (8 << 20), 16 << 20), max(need, 32 << 20)))

    w_big = _build_w_big(w_t, Cin, Cout, Cqp)

    xv_spec_2d = pl.BlockSpec((tq, W + 1, 2 * Cin), lambda c, r: (c * Rp + r, 0, 0))
    xv_spec_1d = pl.BlockSpec((tq, W + 1, 2 * Cin), lambda r: (r, 0, 0))
    w_spec = _resident_spec((4 * Cin, Cqp), w_bytes)
    vec_spec = pl.BlockSpec((1, Cqp), lambda *_: (0, 0))

    if is_act:
        # ---- pass 1: stats-only matmul (no bias, no y writeback) ----
        stats_shape = jax.ShapeDtypeStruct((nc * 8, Cqp), jnp.float32)
        stat_spec = pl.BlockSpec((8, Cqp), lambda c, r: (c, 0))   # one block per core
        col_sum, col_ssq = pl.pallas_call(
            functools.partial(_stats_kernel, tq=tq, width=W),
            out_shape=(stats_shape, stats_shape),
            grid_spec=pltpu.PrefetchScalarGridSpec(
                num_scalar_prefetch=0, grid=(nc, Rp),
                in_specs=[xv_spec_2d, w_spec],
                out_specs=(stat_spec, stat_spec)),
            compiler_params=pltpu.CompilerParams(
                dimension_semantics=("parallel", "arbitrary"),
                vmem_limit_bytes=vmem_limit),
        )(xv, w_big)

        # ---- finalize BN statistics (tiny per-channel math; biased batch variance) ----
        # TODO(synk): E[x^2]-E[x]^2 in f32 can cancel for very large N*H*W when
        # |mean| >> std; a per-tile-centered (Chan/Welford) combine would be more robust.
        count = float(N * Hout * Wout)
        ch_sum = col_sum.reshape(nc, 8, Cqp)[:, 0, :Cq].sum(0).reshape(4, Cout).sum(0)
        ch_ssq = col_ssq.reshape(nc, 8, Cqp)[:, 0, :Cq].sum(0).reshape(4, Cout).sum(0)
        mean = ch_sum / count
        var = jnp.maximum(ch_ssq / count - mean * mean, 0.0)
        scale = gamma.astype(jnp.float32) * jax.lax.rsqrt(var + eps)
        shift = beta.astype(jnp.float32) - mean * scale   # deconv bias dropped: BN cancels it
    else:
        scale = jnp.ones((Cout,), jnp.float32)
        shift = b.astype(jnp.float32)

    scale4 = jnp.pad(jnp.tile(scale, 4), (0, Cqp - Cq)).reshape(1, Cqp)
    shift4 = jnp.pad(jnp.tile(shift, 4), (0, Cqp - Cq)).reshape(1, Cqp)

    # ---- pass 2: recompute matmul fused with (BN +) ReLU, parallel over row tiles ----
    out_spec = pl.BlockSpec((tq, W, Cqp), lambda r: (r, 0, 0))
    out_flat = pl.pallas_call(
        functools.partial(_apply_kernel, tq=tq, width=W, relu=is_act),
        out_shape=jax.ShapeDtypeStruct((Qpad, W, Cqp), out_dtype),
        grid_spec=pltpu.PrefetchScalarGridSpec(
            num_scalar_prefetch=0, grid=(Rtot,),
            in_specs=[xv_spec_1d, w_spec, vec_spec, vec_spec],
            out_specs=out_spec),
        compiler_params=pltpu.CompilerParams(
            dimension_semantics=("parallel",),
            vmem_limit_bytes=vmem_limit),
    )(xv, w_big, scale4, shift4)

    # ---- de-interleave phases -> NCHW ----
    # TODO(synk): a consumer that accepts NHWC / (N,H,W,2,2,Cout) can skip this
    # transpose (a full extra HBM read+write); with Cout % 32 == 0 the column slice
    # disappears as well (Cqp == 4*Cout).
    out = out_flat[:NH, :, :Cq].reshape(N, H, W, 2, 2, Cout)
    out = out.transpose(0, 5, 1, 3, 2, 4).reshape(N, Cout, Hout, Wout)
    return out


# -------------------------------- reference --------------------------------------
def _reference(x, w_t, b, gamma, beta, *, is_act=True, stride=2, padding=1,
               output_padding=1, eps=1e-5):
    K = w_t.shape[2]
    w_conv = jnp.transpose(jnp.flip(w_t, axis=(2, 3)), (1, 0, 2, 3))   # (Cout, Cin, K, K)
    pad_lo = K - 1 - padding
    pad_hi = K - 1 - padding + output_padding
    y = jax.lax.conv_general_dilated(
        x, w_conv, window_strides=(1, 1),
        padding=((pad_lo, pad_hi), (pad_lo, pad_hi)),
        lhs_dilation=(stride, stride),
        dimension_numbers=("NCHW", "OIHW", "NCHW"))
    y = y + b[None, :, None, None]
    if is_act:
        mean = jnp.mean(y, axis=(0, 2, 3), keepdims=True)
        var = jnp.mean((y - mean) ** 2, axis=(0, 2, 3), keepdims=True)
        y = (y - mean) * jax.lax.rsqrt(var + eps) * gamma[None, :, None, None] \
            + beta[None, :, None, None]
        y = jnp.maximum(y, 0.0)
    return y


# ----------------------------------- main ----------------------------------------
if __name__ == "__main__":
    N, Cin, Cout, H, W = 2, 4, 8, 16, 16
    key = jax.random.PRNGKey(0)
    kx, kw, kb, kg, kbeta = jax.random.split(key, 5)

    x = jax.random.normal(kx, (N, Cin, H, W), dtype=jnp.float32)
    w_t = 0.1 * jax.random.normal(kw, (Cin, Cout, 3, 3), dtype=jnp.float32)   # ConvT layout
    b = 0.1 * jax.random.normal(kb, (Cout,), dtype=jnp.float32)
    gamma = 1.0 + 0.1 * jax.random.normal(kg, (Cout,), dtype=jnp.float32)
    beta = 0.1 * jax.random.normal(kbeta, (Cout,), dtype=jnp.float32)

    # bf16 MXU operands (f32 accumulation / BN) vs f32 reference -> 2e-2 tolerance
    tol = dict(rtol=2e-2, atol=2e-2)

    # 1) full block (deconv + BN + ReLU), auto tile
    out = jax.block_until_ready(deconv_block(x, w_t, b, gamma, beta, is_act=True))
    assert out.shape == (N, Cout, 2 * H, 2 * W), out.shape
    ref = _reference(x, w_t, b, gamma, beta, is_act=True)
    if not jnp.allclose(out, ref, **tol):
        raise AssertionError("is_act=True mismatch, max err "
                             f"{float(jnp.max(jnp.abs(out - ref)))}")

    # 2) tile that does NOT divide N*H -> multi-tile stats accumulation, two-way
    #    (v7x-style) core split of pass 1, and zero-row padding all exercised
    out2 = jax.block_until_ready(
        deconv_block(x, w_t, b, gamma, beta, is_act=True, tile_rows=3))
    if not jnp.allclose(out2, ref, **tol):
        raise AssertionError("tiled (tile_rows=3) mismatch, max err "
                             f"{float(jnp.max(jnp.abs(out2 - ref)))}")

    # 3) is_act=False path (deconv + bias only, single pass, no stats)
    out3 = jax.block_until_ready(deconv_block(x, w_t, b, gamma, beta, is_act=False))
    ref3 = _reference(x, w_t, b, gamma, beta, is_act=False)
    if not jnp.allclose(out3, ref3, **tol):
        raise AssertionError("is_act=False mismatch, max err "
                             f"{float(jnp.max(jnp.abs(out3 - ref3)))}")

    print("KERNEL_OK")
</pallas_src>

<mosaic_0001>
module attributes {stable_mosaic.version = 11 : i64} {
  func.func @_stats_kernel(%arg0: i32, %arg1: i32, %arg2: memref<32x17x8xbf16, #tpu.memory_space<vmem>>, %arg3: memref<16x128xbf16, #tpu.memory_space<vmem>>, %arg4: memref<8x128xf32, #tpu.memory_space<vmem>>, %arg5: memref<8x128xf32, #tpu.memory_space<vmem>>) attributes {dimension_semantics = [#tpu.dimension_semantics<parallel>, #tpu.dimension_semantics<arbitrary>], iteration_bounds = array<i64: 1, 1>, scalar_prefetch = 0 : i64, scratch_operands = 0 : i64, tpu.core_type = #tpu.core_type<tc>, window_params = [{transform_indices = @transform_0, window_bounds = array<i64: 32, 17, 8>}, {pipeline_mode = #tpu.pipeline_mode<synchronous>, transform_indices = @transform_1, window_bounds = array<i64: 16, 128>}, {transform_indices = @transform_2, window_bounds = array<i64: 8, 128>}, {transform_indices = @transform_3, window_bounds = array<i64: 8, 128>}]} {
    %c0_i32 = arith.constant 0 : i32
    %0 = arith.cmpi eq, %arg1, %c0_i32 : i32
    %1 = arith.extui %0 : i1 to i32
    %c0_i32_0 = arith.constant 0 : i32
    %2 = arith.cmpi ne, %1, %c0_i32_0 : i32
    scf.if %2 {
      %cst_10 = arith.constant 0.000000e+00 : f32
      %12 = vector.broadcast %cst_10 : f32 to vector<8x128xf32>
      %c0_11 = arith.constant 0 : index
      %c0_12 = arith.constant 0 : index
      %13 = vector.load %arg4[%c0_11, %c0_12] : memref<8x128xf32, #tpu.memory_space<vmem>>, vector<8x128xf32>
      tpu.vector_store %arg4[%c0_11, %c0_12], %12 {strides = array<i32>} : memref<8x128xf32, #tpu.memory_space<vmem>>, vector<8x128xf32>,
      %cst_13 = arith.constant 0.000000e+00 : f32
      %14 = vector.broadcast %cst_13 : f32 to vector<8x128xf32>
      %c0_14 = arith.constant 0 : index
      %c0_15 = arith.constant 0 : index
      %15 = vector.load %arg5[%c0_14, %c0_15] : memref<8x128xf32, #tpu.memory_space<vmem>>, vector<8x128xf32>
      tpu.vector_store %arg5[%c0_14, %c0_15], %14 {strides = array<i32>} : memref<8x128xf32, #tpu.memory_space<vmem>>, vector<8x128xf32>,
    } else {
    }
    %cst = arith.constant 0.000000e+00 : f32
    %3 = vector.broadcast %cst : f32 to vector<1x128xf32>
    %c0_i32_1 = arith.constant 0 : i32
    %c32_i32 = arith.constant 32 : i32
    %4 = arith.addi %c0_i32_1, %c32_i32 : i32
    %c1_i32 = arith.constant 1 : i32
    %5:2 = scf.for %arg6 = %c0_i32_1 to %4 step %c1_i32 iter_args(%arg7 = %3, %arg8 = %3) -> (vector<1x128xf32>, vector<1x128xf32>)  : i32 {
      %12 = arith.index_cast %arg6 : i32 to index
      %c0_10 = arith.constant 0 : index
      %c0_11 = arith.constant 0 : index
      %13 = vector.load %arg2[%12, %c0_10, %c0_11] : memref<32x17x8xbf16, #tpu.memory_space<vmem>>, vector<1x17x8xbf16>
      %14 = vector.shape_cast %13 : vector<1x17x8xbf16> to vector<17x8xbf16>
      %15 = vector.extract_strided_slice %14 {offsets = [0, 0], sizes = [16, 8], strides = [1, 1]} : vector<17x8xbf16> to vector<16x8xbf16>
      %16 = vector.extract_strided_slice %14 {offsets = [1, 0], sizes = [16, 8], strides = [1, 1]} : vector<17x8xbf16> to vector<16x8xbf16>
      %17 = tpu.concatenate %15, %16 in 1 : vector<16x8xbf16>, vector<16x8xbf16> -> vector<16x16xbf16>
      %c0_12 = arith.constant 0 : index
      %c0_13 = arith.constant 0 : index
      %18 = vector.load %arg3[%c0_12, %c0_13] : memref<16x128xbf16, #tpu.memory_space<vmem>>, vector<16x128xbf16>
      %cst_14 = arith.constant dense<0.000000e+00> : vector<16x128xf32>
      %19 = tpu.matmul %17, %18, %cst_14 {dimension_numbers = #tpu.dot_dimension_numbers<[1], [0], [0], [1], [0, 0, 1, 1], [], []>} : vector<16x16xbf16>, vector<16x128xbf16>, vector<16x128xf32> -> vector<16x128xf32>
      %cst_15 = arith.constant dense<0.000000e+00> : vector<128xf32>
      %20 = vector.multi_reduction <add>, %19, %cst_15 [0] : vector<16x128xf32> to vector<128xf32>
      %21 = vector.shape_cast %20 : vector<128xf32> to vector<1x128xf32>
      %22 = arith.addf %arg7, %21 : vector<1x128xf32>
      %23 = arith.mulf %19, %19 : vector<16x128xf32>
      %cst_16 = arith.constant dense<0.000000e+00> : vector<128xf32>
      %24 = vector.multi_reduction <add>, %23, %cst_16 [0] : vector<16x128xf32> to vector<128xf32>
      %25 = vector.shape_cast %24 : vector<128xf32> to vector<1x128xf32>
      %26 = arith.addf %arg8, %25 : vector<1x128xf32>
      scf.yield %22, %26 : vector<1x128xf32>, vector<1x128xf32>
    }
    %c32_i32_2 = arith.constant 32 : i32
    %c0 = arith.constant 0 : index
    %c0_3 = arith.constant 0 : index
    %6 = vector.load %arg4[%c0, %c0_3] : memref<8x128xf32, #tpu.memory_space<vmem>>, vector<1x128xf32>
    %7 = arith.addf %6, %5#0 : vector<1x128xf32>
    %c0_4 = arith.constant 0 : index
    %c0_5 = arith.constant 0 : index
    %8 = vector.load %arg4[%c0_4, %c0_5] : memref<8x128xf32, #tpu.memory_space<vmem>>, vector<1x128xf32>
    tpu.vector_store %arg4[%c0_4, %c0_5], %7 {strides = array<i32>} : memref<8x128xf32, #tpu.memory_space<vmem>>, vector<1x128xf32>,
    %c0_6 = arith.constant 0 : index
    %c0_7 = arith.constant 0 : index
    %9 = vector.load %arg5[%c0_6, %c0_7] : memref<8x128xf32, #tpu.memory_space<vmem>>, vector<1x128xf32>
    %10 = arith.addf %9, %5#1 : vector<1x128xf32>
    %c0_8 = arith.constant 0 : index
    %c0_9 = arith.constant 0 : index
    %11 = vector.load %arg5[%c0_8, %c0_9] : memref<8x128xf32, #tpu.memory_space<vmem>>, vector<1x128xf32>
    tpu.vector_store %arg5[%c0_8, %c0_9], %10 {strides = array<i32>} : memref<8x128xf32, #tpu.memory_space<vmem>>, vector<1x128xf32>,
    return
  }
  func.func @transform_0(%arg0: i32, %arg1: i32) -> (i32, i32, i32) {
    %c1_i32 = arith.constant 1 : i32
    %0 = arith.muli %arg0, %c1_i32 : i32
    %1 = arith.addi %0, %arg1 : i32
    %c0_i32 = arith.constant 0 : i32
    %c0_i32_0 = arith.constant 0 : i32
    %c0_i32_1 = arith.constant 0 : i32
    return %1, %c0_i32, %c0_i32_0 : i32, i32, i32
  }
  func.func @transform_1(%arg0: i32, %arg1: i32) -> (i32, i32) {
    %c0_i32 = arith.constant 0 : i32
    %c0_i32_0 = arith.constant 0 : i32
    %c0_i32_1 = arith.constant 0 : i32
    return %c0_i32, %c0_i32_0 : i32, i32
  }
  func.func @transform_2(%arg0: i32, %arg1: i32) -> (i32, i32) {
    %c0_i32 = arith.constant 0 : i32
    %c0_i32_0 = arith.constant 0 : i32
    return %arg0, %c0_i32 : i32, i32
  }
  func.func @transform_3(%arg0: i32, %arg1: i32) -> (i32, i32) {
    %c0_i32 = arith.constant 0 : i32
    %c0_i32_0 = arith.constant 0 : i32
    return %arg0, %c0_i32 : i32, i32
  }
}

module attributes {stable_mosaic.version = 11 : i64} {
  func.func @_apply_kernel(%arg0: i32, %arg1: memref<32x17x8xbf16, #tpu.memory_space<vmem>>, %arg2: memref<16x128xbf16, #tpu.memory_space<vmem>>, %arg3: memref<1x128xf32, #tpu.memory_space<vmem>>, %arg4: memref<1x128xf32, #tpu.memory_space<vmem>>, %arg5: memref<32x16x128xf32, #tpu.memory_space<vmem>>) attributes {dimension_semantics = [#tpu.dimension_semantics<parallel>], iteration_bounds = array<i64: 1>, scalar_prefetch = 0 : i64, scratch_operands = 0 : i64, tpu.core_type = #tpu.core_type<tc>, window_params = [{transform_indices = @transform_0, window_bounds = array<i64: 32, 17, 8>}, {pipeline_mode = #tpu.pipeline_mode<synchronous>, transform_indices = @transform_1, window_bounds = array<i64: 16, 128>}, {pipeline_mode = #tpu.pipeline_mode<synchronous>, transform_indices = @transform_2, window_bounds = array<i64: 1, 128>}, {pipeline_mode = #tpu.pipeline_mode<synchronous>, transform_indices = @transform_3, window_bounds = array<i64: 1, 128>}, {transform_indices = @transform_4, window_bounds = array<i64: 32, 16, 128>}]} {
    %c0 = arith.constant 0 : index
    %c0_0 = arith.constant 0 : index
    %0 = vector.load %arg3[%c0, %c0_0] : memref<1x128xf32, #tpu.memory_space<vmem>>, vector<1x128xf32>
    %c0_1 = arith.constant 0 : index
    %c0_2 = arith.constant 0 : index
    %1 = vector.load %arg4[%c0_1, %c0_2] : memref<1x128xf32, #tpu.memory_space<vmem>>, vector<1x128xf32>
    %c0_i32 = arith.constant 0 : i32
    %c32_i32 = arith.constant 32 : i32
    %2 = arith.addi %c0_i32, %c32_i32 : i32
    %c1_i32 = arith.constant 1 : i32
    scf.for %arg6 = %c0_i32 to %2 step %c1_i32  : i32 {
      %3 = arith.index_cast %arg6 : i32 to index
      %c0_4 = arith.constant 0 : index
      %c0_5 = arith.constant 0 : index
      %4 = vector.load %arg1[%3, %c0_4, %c0_5] : memref<32x17x8xbf16, #tpu.memory_space<vmem>>, vector<1x17x8xbf16>
      %5 = vector.shape_cast %4 : vector<1x17x8xbf16> to vector<17x8xbf16>
      %6 = vector.extract_strided_slice %5 {offsets = [0, 0], sizes = [16, 8], strides = [1, 1]} : vector<17x8xbf16> to vector<16x8xbf16>
      %7 = vector.extract_strided_slice %5 {offsets = [1, 0], sizes = [16, 8], strides = [1, 1]} : vector<17x8xbf16> to vector<16x8xbf16>
      %8 = tpu.concatenate %6, %7 in 1 : vector<16x8xbf16>, vector<16x8xbf16> -> vector<16x16xbf16>
      %c0_6 = arith.constant 0 : index
      %c0_7 = arith.constant 0 : index
      %9 = vector.load %arg2[%c0_6, %c0_7] : memref<16x128xbf16, #tpu.memory_space<vmem>>, vector<16x128xbf16>
      %cst = arith.constant dense<0.000000e+00> : vector<16x128xf32>
      %10 = tpu.matmul %8, %9, %cst {dimension_numbers = #tpu.dot_dimension_numbers<[1], [0], [0], [1], [0, 0, 1, 1], [], []>} : vector<16x16xbf16>, vector<16x128xbf16>, vector<16x128xf32> -> vector<16x128xf32>
      %11 = vector.broadcast %0 : vector<1x128xf32> to vector<16x128xf32>
      %12 = arith.mulf %10, %11 : vector<16x128xf32>
      %13 = vector.broadcast %1 : vector<1x128xf32> to vector<16x128xf32>
      %14 = arith.addf %12, %13 : vector<16x128xf32>
      %cst_8 = arith.constant 0.000000e+00 : f32
      %15 = vector.broadcast %cst_8 : f32 to vector<16x128xf32>
      %16 = arith.maximumf %14, %15 : vector<16x128xf32>
      %17 = arith.index_cast %arg6 : i32 to index
      %c0_9 = arith.constant 0 : index
      %c0_10 = arith.constant 0 : index
      %18 = vector.load %arg5[%17, %c0_9, %c0_10] : memref<32x16x128xf32, #tpu.memory_space<vmem>>, vector<1x16x128xf32>
      %19 = vector.shape_cast %18 : vector<1x16x128xf32> to vector<16x128xf32>
      %20 = vector.shape_cast %16 : vector<16x128xf32> to vector<1x16x128xf32>
      tpu.vector_store %arg5[%17, %c0_9, %c0_10], %20 {strides = array<i32>} : memref<32x16x128xf32, #tpu.memory_space<vmem>>, vector<1x16x128xf32>,
    }
    %c32_i32_3 = arith.constant 32 : i32
    return
  }
  func.func @transform_0(%arg0: i32) -> (i32, i32, i32) {
    %c0_i32 = arith.constant 0 : i32
    %c0_i32_0 = arith.constant 0 : i32
    %c0_i32_1 = arith.constant 0 : i32
    return %arg0, %c0_i32, %c0_i32_0 : i32, i32, i32
  }
  func.func @transform_1(%arg0: i32) -> (i32, i32) {
    %c0_i32 = arith.constant 0 : i32
    %c0_i32_0 = arith.constant 0 : i32
    %c0_i32_1 = arith.constant 0 : i32
    return %c0_i32, %c0_i32_0 : i32, i32
  }
  func.func @transform_2(%arg0: i32) -> (i32, i32) {
    %c0_i32 = arith.constant 0 : i32
    %c0_i32_0 = arith.constant 0 : i32
    %c0_i32_1 = arith.constant 0 : i32
    return %c0_i32, %c0_i32_0 : i32, i32
  }
  func.func @transform_3(%arg0: i32) -> (i32, i32) {
    %c0_i32 = arith.constant 0 : i32
    %c0_i32_0 = arith.constant 0 : i32
    %c0_i32_1 = arith.constant 0 : i32
    return %c0_i32, %c0_i32_0 : i32, i32
  }
  func.func @transform_4(%arg0: i32) -> (i32, i32, i32) {
    %c0_i32 = arith.constant 0 : i32
    %c0_i32_0 = arith.constant 0 : i32
    %c0_i32_1 = arith.constant 0 : i32
    return %arg0, %c0_i32, %c0_i32_0 : i32, i32, i32
  }
}

</mosaic_0001>

<bundles_post_ra>
// kernel: tile.18
= control target key start
LH: loop header
LB: loop body
LE: loop exit
PB: predicated region body
PF: predicated region fallthrough
CT: control target
= control target key end

     0   :  { %s22_s0 = inlined_call_operand.vmem [shape: f32[8], index: 0, kind: input, shape index: {}]   ;;  %s23_s1 = inlined_call_operand.vmem [shape: f32[4,8], index: 1, kind: output, shape index: {}]  }
   0x1   :  { %v4_v0 = vld [vmem:[%s22_s0] ss:$0 sm:$0xff] }
   0x2   :  { %5 = vst [vmem:[%s23_s1] sm:$0xf] %v4_v0 }

// kernel: tile.19
= control target key start
LH: loop header
LB: loop body
LE: loop exit
PB: predicated region body
PF: predicated region fallthrough
CT: control target
= control target key end

     0   :  { %vm7_vm0 = vcmask 64512   ;;  %s37_s8 = smov 8   ;;  %s38_s9 = smov 16   ;;  %vm13_vm1 = vcmask 261312   ;;  %vm19_vm2 = vcmask 195712   ;;  %vm25_vm3 = vcmask 130112   ;;  %s55_s0 = inlined_call_operand.vmem [shape: f32[4,8], index: 0, kind: input, shape index: {}]   ;;  %s56_s1 = inlined_call_operand.vmem [shape: f32[32], index: 1, kind: output, shape index: {}]  }
   0x1   :  { %v4_v0 = vld [vmem:[%s55_s0] sm:$0xf]  ;;  %s36_s0 = smov 24  }
   0x2   :  { %5 = vst [vmem:[#allocation1] sm:$0xf] %v4_v0 }
   0x9   :  { %v10_v1 = vld [vmem:[#allocation1 + $0x3] sm:$0x1]   ;;  %v22_v2 = vld [vmem:[#allocation1 + $0x1] sm:$0x1]   ;;  %v6_v3 = vld [vmem:[#allocation1] sm:$0x1]  }
   0xa   :  { %11 = vrot.lane.b32.xlu0 %v10_v1, %s36_s0  ;;  %23 = vrot.lane.b32.xlu1 %v22_v2, %s37_s8  ;;  %v16_v4 = vld [vmem:[#allocation1 + $0x2] sm:$0x1]   ;;  %8 = vst.msk [vmem:[#allocation0] sm:$0x1] %vm7_vm0, %v6_v3  }
   0xe   :  { %17 = vrot.lane.b32.xlu0 %v16_v4, %s38_s9 }
  0x7c   :  { %v12_v5 = vpop.permute.xlu0 %11   ;;  %v24_v6 = vpop.permute.xlu1 %23  }
  0x7d   :  { %14 = vst.msk [vmem:[#allocation0] sm:$0x1] %vm13_vm1, %v12_v5  }
  0x80   :  { %v18_v7 = vpop.permute.xlu0 %17  }
  0x81   :  { %20 = vst.msk [vmem:[#allocation0] sm:$0x1] %vm19_vm2, %v18_v7  }
  0x82   :  { %26 = vst.msk [vmem:[#allocation0] sm:$0x1] %vm25_vm3, %v24_v6  }
  0x89   :  { %v30_v8 = vld [vmem:[#allocation0] sm:$0x1] }
  0x8a   :  { %32 = vst [vmem:[%s56_s1] sm:$0x1] %v30_v8 }

// kernel: deconv_block.2
= control target key start
LH: loop header
LB: loop body
LE: loop exit
PB: predicated region body
PF: predicated region fallthrough
CT: control target
= control target key end

     0   :  { %v257_v0 = vmov 0.0   ;;  %v245_v1 = vmov 0.0   ;;  %v249_v2 = vmov 0.0   ;;  %s287_s16 = smov 0   ;;  %s314_s0 = inlined_call_operand.vmem [shape: bf16[32,17,8], index: 0, kind: input, shape index: {}]   ;;  %s315_s1 = inlined_call_operand.vmem [shape: bf16[16,128], index: 1, kind: input, shape index: {}]   ;;  %s316_s2 = inlined_call_operand.vmem [shape: f32[8,128], index: 2, kind: output, shape index: {0}]   ;;  %s317_s3 = inlined_call_operand.vmem [shape: f32[8,128], index: 3, kind: output, shape index: {1}]  }
   0x1   :  { %43 = vst [vmem:[%s316_s2] sm:$0xff] %v257_v0  ;;  %44 = vst [vmem:[%s317_s3] sm:$0xff] %v257_v0 }
   0x2 LB: > { %v258_v3 = vmov 0.0   ;;  %v232_v4 = vld [vmem:[%s315_s1] sm:$0xff]   ;;  %s193_s19 = smul.u32 12, %s255_s16  ;;  %vm259_vm0 = vmmov 0   ;;  %vm67_vm1 = vsmask.f32 7424  ;;  %s255_s16 = sphi %s287_s16, %s50_s16   ;;  %v251_v2 = vphi %v249_v2, %v250_v2   ;;  %v247_v1 = vphi %v245_v1, %v246_v1  }
   0x3   : > { %196 = vmatprep.subr.bf16.mxu0 %v258_v3  ;;  %198 = vmatprep.mubr.msk.bf16.mxu0 %vm259_vm0, %v258_v3  ;;  %s260_s23 = smov 8   ;;  %vm82_vm2 = vcmask 64512   ;;  %vm93_vm3 = vcmask 130048   ;;  %s50_s16 = sadd.s32 1, %s255_s16  }
   0x4   : > { %197 = vmatpush3.bf16.msra.mxu0 %v232_v4  ;;  %s55_s22 = scalar_lea.vmem %s314_s0, %s193_s19  ;;  %p47_p0 = scmp.ge.s32.totalorder %s50_s16, 32  }
   0x5   : > { %v230_v5 = vld [vmem:[%s55_s22] sm:$0xff]   ;;  %v231_v6 = vld [vmem:[%s55_s22 + $0x8] ss:$0 sps:$4 sm:$0x11]  }
   0x6   : > { %v69_v7 = vshrl.u32 %v230_v5, 16  ;;  %v71_v8 = vshll.u32 %v230_v5, 16  ;;  %v76_v9 = vshll.u32 %v231_v6, 16 }
   0x8   : > { %v73_v10 = vrot.slane %v71_v8, 1  ;;  %v78_v11 = vrot.slane %v76_v9, 1  ;;  %v155_v38 = vld [vmem:[%s316_s2] sm:$0x1] (%p47_p0) }
   0x9   :  { %v158_v39 = vld [vmem:[%s317_s3] sm:$0x1] (%p47_p0) }
   0xa   : > { %v74_v12 = vor.u32 %v73_v10, %v69_v7 }
   0xc   : > { %v79_v13 = vsel %vm67_vm1, %v74_v12, %v78_v11 }
   0xd   : > { %80 = vrot.lane.b32.xlu0 %v79_v13, %s260_s23 }
  0x7f   : > { %v81_v14 = vpop.permute.xlu0 %80 }
  0x80   : > { %v84_v15 = vsel %vm82_vm2, %v230_v5, %v81_v14 }
  0x81   : > { %199 = vmatmul.mubr.msk.bf16.vlgmr.msra.gmra.mrb[0].mxu0 %vm93_vm3, %v84_v15 }
 0x154   : > { %v130_v16 = vpop.f32.mrb[0].mxu0 }
 0x155   : > { %v200_v17 = vpop.f32.mrb[1].mxu0  ;;  %v145_v19 = vmul.f32 %v130_v16, %v130_v16 }
 0x156   : > { %v133_v18 = vpop.f32.mrb[2].mxu0 }
 0x157   : > { %v137_v20 = vadd.f32 %v133_v18, %v130_v16  ;;  %v146_v21 = vmul.f32 %v133_v18, %v133_v18  ;;  %v201_v22 = vpop.f32.mrb[3].mxu0 }
 0x159   : > { %v138_v23 = vrot.slane %v137_v20, 4  ;;  %v147_v24 = vadd.f32 %v146_v21, %v145_v19 }
 0x15b   : > { %v139_v25 = vadd.f32 %v138_v23, %v137_v20  ;;  %v148_v26 = vrot.slane %v147_v24, 4 }
 0x15d   : > { %v140_v27 = vrot.slane %v139_v25, 2  ;;  %v149_v28 = vadd.f32 %v148_v26, %v147_v24 }
 0x15f   : > { %v141_v29 = vadd.f32 %v140_v27, %v139_v25  ;;  %v150_v30 = vrot.slane %v149_v28, 2 }
 0x161   : > { %v142_v31 = vrot.slane %v141_v29, 1  ;;  %v151_v32 = vadd.f32 %v150_v30, %v149_v28 }
 0x163   : > { %v143_v33 = vadd.f32 %v142_v31, %v141_v29  ;;  %v152_v34 = vrot.slane %v151_v32, 1  ;;  %49 = sbr.rel (!%p47_p0) target bundleno = 2 (0x2), region = 51 }
 0x165   : > { %v144_v35 = vadd.f32 %v251_v2, %v143_v33   ;;  %v153_v36 = vadd.f32 %v152_v34, %v151_v32 }
 0x167   : > { %v154_v37 = vadd.f32 %v247_v1, %v153_v36   ;;  %v250_v2 = vmov %v144_v35   ;;  %v156_v40 = vadd.f32 (%p47_p0), %v155_v38, %v144_v35 }
 0x169   : > { %v246_v1 = vmov %v154_v37   ;;  %v159_v41 = vadd.f32 (%p47_p0), %v158_v39, %v154_v37  ;;  %157 = vst [vmem:[%s316_s2] sm:$0x1] (%p47_p0), %v156_v40 }
 0x16b   :  { %160 = vst [vmem:[%s317_s3] sm:$0x1] %v159_v41 }

// kernel: deconv_block.3
= control target key start
LH: loop header
LB: loop body
LE: loop exit
PB: predicated region body
PF: predicated region fallthrough
CT: control target
= control target key end

     0   :  { %s218_s19 = smov 0   ;;  %s237_s0 = inlined_call_operand.vmem [shape: bf16[32,17,8], index: 0, kind: input, shape index: {}]   ;;  %s238_s1 = inlined_call_operand.vmem [shape: bf16[16,128], index: 1, kind: input, shape index: {}]   ;;  %s239_s2 = inlined_call_operand.vmem [shape: f32[1,128], index: 2, kind: input, shape index: {}]   ;;  %s240_s3 = inlined_call_operand.vmem [shape: f32[1,128], index: 3, kind: input, shape index: {}]   ;;  %s241_s4 = inlined_call_operand.vmem [shape: f32[32,16,128], index: 4, kind: output, shape index: {}]  }
   0x1   :  { %v150_v0 = vld [vmem:[%s239_s2] ss:$0 sm:$0xff] }
   0x2   :  { %v151_v1 = vld [vmem:[%s240_s3] ss:$0 sm:$0xff] }
   0x3 LB: > { %v184_v2 = vmov 0.0   ;;  %v175_v3 = vld [vmem:[%s238_s1] sm:$0xff]   ;;  %s153_s22 = smul.u32 12, %s182_s19  ;;  %vm185_vm0 = vmmov 0   ;;  %vm40_vm1 = vsmask.f32 7424  ;;  %s182_s19 = sphi %s218_s19, %s25_s19  }
   0x4   : > { %156 = vmatprep.subr.bf16.mxu0 %v184_v2  ;;  %158 = vmatprep.mubr.msk.bf16.mxu0 %vm185_vm0, %v184_v2  ;;  %s186_s24 = smov 8   ;;  %vm55_vm2 = vcmask 64512   ;;  %vm66_vm3 = vcmask 130048   ;;  %s152_s25 = sshll.u32 %s182_s19, 4 }
   0x5   : > { %157 = vmatpush3.bf16.msra.mxu0 %v175_v3  ;;  %s28_s23 = scalar_lea.vmem %s237_s0, %s153_s22  ;;  %s129_s28 = scalar_lea.vmem %s241_s4, %s152_s25 }
   0x6   : > { %v173_v4 = vld [vmem:[%s28_s23] sm:$0xff]   ;;  %v174_v5 = vld [vmem:[%s28_s23 + $0x8] ss:$0 sps:$4 sm:$0x11]   ;;  %s25_s19 = sadd.s32 1, %s182_s19  }
   0x7   : > { %v42_v6 = vshrl.u32 %v173_v4, 16  ;;  %v44_v7 = vshll.u32 %v173_v4, 16  ;;  %v49_v8 = vshll.u32 %v174_v5, 16  ;;  %p22_p0 = scmp.ge.s32.totalorder %s25_s19, 32  }
   0x9   : > { %v46_v9 = vrot.slane %v44_v7, 1  ;;  %v51_v10 = vrot.slane %v49_v8, 1 }
   0xb   : > { %v47_v11 = vor.u32 %v46_v9, %v42_v6 }
   0xd   : > { %v52_v12 = vsel %vm40_vm1, %v47_v11, %v51_v10 }
   0xe   : > { %53 = vrot.lane.b32.xlu0 %v52_v12, %s186_s24 }
  0x80   : > { %v54_v13 = vpop.permute.xlu0 %53 }
  0x81   : > { %v57_v14 = vsel %vm55_vm2, %v173_v4, %v54_v13 }
  0x82   : > { %159 = vmatmul.mubr.msk.bf16.vlgmr.msra.gmra.mrb[0].mxu0 %vm66_vm3, %v57_v14 }
 0x155   : > { %v103_v15 = vpop.f32.mrb[0].mxu0 }
 0x156   : > { %v116_v16 = vmul.f32 %v150_v0, %v103_v15  ;;  %v160_v17 = vpop.f32.mrb[1].mxu0 }
 0x157   : > { %v106_v18 = vpop.f32.mrb[2].mxu0 }
 0x158   : > { %v124_v19 = vadd.f32 %v151_v1, %v116_v16  ;;  %v117_v20 = vmul.f32 %v150_v0, %v106_v18  ;;  %v161_v21 = vpop.f32.mrb[3].mxu0  ;;  %24 = sbr.rel (!%p22_p0) target bundleno = 3 (0x3), region = 45 }
 0x15a   : > { %v126_v22 = vmax.f32 %v124_v19, 0.0  ;;  %v125_v23 = vadd.f32 %v151_v1, %v117_v20 }
 0x15c   : > { %130 = vst [vmem:[%s129_s28] sm:$0xff] %v126_v22  ;;  %v127_v24 = vmax.f32 %v125_v23, 0.0 }
 0x15e   : > { %131 = vst [vmem:[%s129_s28 + $0x8] sm:$0xff] %v127_v24 }

</bundles_post_ra>
